<compile_context>
chip_gen: v5e
topology: v5e:2x2
jax: 0.10.0
libtpu: 0.0.40
codegen_flags: <defaults>
</compile_context>

<pallas_src>
import functools

import jax
import jax.numpy as jnp
from jax import lax
from jax.experimental import pallas as pl
from jax.experimental.pallas import tpu as pltpu

BN_EPS = 1e-5
LANES = 128


def _round_up(x, m):
    return ((x + m - 1) // m) * m


def _pick_tile(n, preferred):
    """Largest multiple-of-8 divisor of n that is <= preferred, else n itself."""
    best = None
    c = 8
    while c <= min(n, preferred):
        if n % c == 0:
            best = c
        c += 8
    return best if best is not None else n


# ---------------------------------------------------------------------------
# Kernel 1: global average pool (chunked over HW) + Linear (bf16 MXU matmul)
# ---------------------------------------------------------------------------
def _pool_matmul_kernel(feats_ref, w_ref, emb_ref, acc_ref, *, inv_hw):
    """Grid = (B tiles, HW chunks); HW is the trailing reduction axis.

    feats_ref : (b_tile, hw_chunk, F) bf16   backbone features, channels-last
    w_ref     : (F, E_pad)            bf16   embed weight (zero-padded columns)
    emb_ref   : (b_tile, E_pad)       f32    Linear output (bias omitted: it
                                             cancels through training-mode BN)
    acc_ref   : (b_tile, F)           f32    VMEM scratch, pooled-sum accumulator
    """
    k = pl.program_id(1)

    @pl.when(k == 0)
    def _init():
        acc_ref[...] = jnp.zeros_like(acc_ref)

    # Per-chunk partial sum in f32: cheap adds that hide under the next chunk's DMA.
    acc_ref[...] += jnp.sum(feats_ref[...].astype(jnp.float32), axis=1)

    @pl.when(k == pl.num_programs(1) - 1)
    def _finalize():
        pooled = (acc_ref[...] * inv_hw).astype(w_ref.dtype)       # mean pool, bf16 for MXU
        emb_ref[...] = jnp.dot(pooled, w_ref[...],
                               preferred_element_type=jnp.float32)


# ---------------------------------------------------------------------------
# Kernel 2: BatchNorm1d, training-mode batch statistics over the FULL batch
# ---------------------------------------------------------------------------
def _batchnorm_kernel(emb_ref, gamma_ref, beta_ref, out_ref):
    emb = emb_ref[...]                                             # (B, E_pad) f32
    mean = jnp.mean(emb, axis=0, keepdims=True)
    var = jnp.mean(jnp.square(emb - mean), axis=0, keepdims=True)  # biased (PyTorch train)
    xhat = (emb - mean) * lax.rsqrt(var + BN_EPS)
    out_ref[...] = (xhat * gamma_ref[...] + beta_ref[...]).astype(out_ref.dtype)


def encoder_head(feats_bhwc, w, gamma, beta, *, hw_chunk=None, b_tile=None):
    """(B, H', W', F) channels-last feature map -> (B, E) embedding."""
    B, Hp, Wp, F = feats_bhwc.shape
    HW = Hp * Wp
    E = w.shape[1]
    E_pad = _round_up(E, LANES)

    if b_tile is None:
        b_tile = _pick_tile(B, 32)
    if hw_chunk is None:
        hw_chunk = _pick_tile(HW, 512)

    assert F % LANES == 0, "stand-in expects a lane-aligned feature dim"
    assert B % b_tile == 0 and (b_tile % 8 == 0 or b_tile == B)
    assert HW % hw_chunk == 0 and (hw_chunk % 8 == 0 or hw_chunk == HW)

    # Lane-dense padding of the tiny parameters (output sliced back to E below).
    w_p = jnp.pad(w.astype(jnp.bfloat16), ((0, 0), (0, E_pad - E)))
    gamma_p = jnp.zeros((1, E_pad), jnp.float32).at[0, :E].set(gamma.astype(jnp.float32))
    beta_p = jnp.zeros((1, E_pad), jnp.float32).at[0, :E].set(beta.astype(jnp.float32))

    # Channels-last already: this reshape is a free view, not a transpose.
    feats = feats_bhwc.reshape(B, HW, F).astype(jnp.bfloat16)

    grid = (B // b_tile, HW // hw_chunk)
    kernel1 = functools.partial(_pool_matmul_kernel, inv_hw=1.0 / HW)

    emb = pl.pallas_call(
        kernel1,
        out_shape=jax.ShapeDtypeStruct((B, E_pad), jnp.float32),
        grid_spec=pltpu.PrefetchScalarGridSpec(
            num_scalar_prefetch=0,
            grid=grid,
            in_specs=[
                pl.BlockSpec((b_tile, hw_chunk, F), lambda i, k: (i, k, 0)),
                pl.BlockSpec((F, E_pad), lambda i, k: (0, 0)),
            ],
            out_specs=pl.BlockSpec((b_tile, E_pad), lambda i, k: (i, 0)),
            scratch_shapes=[pltpu.VMEM((b_tile, F), jnp.float32)],
        ),
        compiler_params=pltpu.CompilerParams(
            dimension_semantics=("parallel", "arbitrary"),
            vmem_limit_bytes=32 * 1024 * 1024,   # above v5e's 16 MiB default, safe on v7x
        ),
        cost_estimate=pl.CostEstimate(
            flops=B * HW * F + 2 * B * F * E_pad,
            transcendentals=0,
            bytes_accessed=feats.size * 2 + w_p.size * 2 + B * E_pad * 4,
        ),
    )(feats, w_p)

    # BatchNorm over the FULL batch in a second, tiny kernel (only B*E_pad
    # elements), so kernel 1's batch axis may be tiled / split across cores.
    out = pl.pallas_call(
        _batchnorm_kernel,
        out_shape=jax.ShapeDtypeStruct((B, E_pad), jnp.float32),
        grid=(1,),
        in_specs=[
            pl.BlockSpec((B, E_pad), lambda i: (0, 0)),
            pl.BlockSpec((1, E_pad), lambda i: (0, 0)),
            pl.BlockSpec((1, E_pad), lambda i: (0, 0)),
        ],
        out_specs=pl.BlockSpec((B, E_pad), lambda i: (0, 0)),
    )(emb, gamma_p, beta_p)

    return out[:, :E]


def standin_backbone(images_nchw, conv_w_hwio):
    """Frozen feature-extractor stand-in for the pretrained ResNet-50 trunk."""
    # TODO(synk): the pretrained, frozen ResNet-50 backbone (53 conv layers) is not
    # re-implemented; one frozen strided conv + ReLU stands in and emits the feature
    # map CHANNELS-LAST (NHWC), so no (B, F, H, W) feature-map transpose is needed
    # before the Pallas head.  Only the tiny 3-channel image is transposed.
    x = jnp.transpose(images_nchw, (0, 2, 3, 1))                   # (B, H, W, C) - small
    feats = lax.conv_general_dilated(
        x, conv_w_hwio, window_strides=(2, 2), padding="SAME",
        dimension_numbers=("NHWC", "HWIO", "NHWC"))
    feats = jax.nn.relu(feats)
    return feats.astype(jnp.bfloat16)   # bf16 in HBM halves the dominant tensor's bytes


def encoder_cnn_forward(images, params, *, hw_chunk=None, b_tile=None):
    feats = standin_backbone(images, params["conv_w"])             # (B, H', W', F)
    # embed_b is intentionally NOT passed: a per-feature constant shift cancels
    # exactly through training-mode BatchNorm.  Re-add it for eval-mode BN.
    return encoder_head(feats, params["embed_w"], params["bn_gamma"],
                        params["bn_beta"], hw_chunk=hw_chunk, b_tile=b_tile)


def encoder_cnn_reference(images, params):
    """Pure-JAX reference that follows the PyTorch forward literally."""
    feats = standin_backbone(images, params["conv_w"])             # bf16, NHWC
    pooled = jnp.mean(feats.astype(jnp.float32), axis=(1, 2))      # avgpool + flatten
    emb = jnp.dot(pooled.astype(jnp.bfloat16), params["embed_w"],
                  preferred_element_type=jnp.float32) + params["embed_b"]
    mean = jnp.mean(emb, axis=0, keepdims=True)
    var = jnp.mean(jnp.square(emb - mean), axis=0, keepdims=True)
    return (emb - mean) * lax.rsqrt(var + BN_EPS) * params["bn_gamma"] + params["bn_beta"]


if __name__ == "__main__":
    key = jax.random.PRNGKey(0)
    k_img, k_conv, k_w, k_b = jax.random.split(key, 4)

    B, C_in, H, W = 16, 3, 16, 16      # small NCHW images (PyTorch convention)
    F = 256                            # stand-in for resnet.fc.in_features (2048)
    E = 32                             # embed_size (padded to 128 lanes inside)

    images = jax.random.normal(k_img, (B, C_in, H, W), dtype=jnp.float32)

    params = {
        # frozen backbone stand-in weights in HWIO so the conv emits NHWC directly
        "conv_w":  0.1 * jax.random.normal(k_conv, (3, 3, C_in, F), dtype=jnp.float32),
        # embed weight stored bf16 in HBM (MXU-native, halves the weight DMA)
        "embed_w": (0.05 * jax.random.normal(k_w, (F, E), dtype=jnp.float32)).astype(jnp.bfloat16),
        "embed_b": 0.01 * jax.random.normal(k_b, (E,), dtype=jnp.float32),
        "bn_gamma": jnp.ones((E,), dtype=jnp.float32),   # PyTorch BN default init
        "bn_beta":  jnp.zeros((E,), dtype=jnp.float32),
    }

    # hw_chunk=16 -> 4 reduction steps; b_tile=8 -> 2 "parallel" batch tiles.
    out = jax.block_until_ready(
        encoder_cnn_forward(images, params, hw_chunk=16, b_tile=8))
    ref = jax.block_until_ready(encoder_cnn_reference(images, params))

    assert out.shape == (B, E), out.shape
    max_err = float(jnp.max(jnp.abs(out - ref)))
    # bf16 MXU matmul with f32 accumulation; differences vs reference are rounding-level.
    assert jnp.allclose(out, ref, atol=2e-3, rtol=2e-3), max_err

    print("KERNEL_OK")
</pallas_src>

<mosaic_0001>
module attributes {stable_mosaic.version = 11 : i64} {
  func.func @_pool_matmul_kernel(%arg0: i32, %arg1: i32, %arg2: memref<8x16x256xbf16, #tpu.memory_space<vmem>>, %arg3: memref<256x128xbf16, #tpu.memory_space<vmem>>, %arg4: memref<8x128xf32, #tpu.memory_space<vmem>>, %arg5: memref<8x256xf32, #tpu.memory_space<vmem>>) attributes {dimension_semantics = [#tpu.dimension_semantics<parallel>, #tpu.dimension_semantics<arbitrary>], iteration_bounds = array<i64: 2, 4>, scalar_prefetch = 0 : i64, scratch_operands = 1 : i64, tpu.core_type = #tpu.core_type<tc>, window_params = [{transform_indices = @transform_0, window_bounds = array<i64: 8, 16, 256>}, {pipeline_mode = #tpu.pipeline_mode<synchronous>, transform_indices = @transform_1, window_bounds = array<i64: 256, 128>}, {transform_indices = @transform_2, window_bounds = array<i64: 8, 128>}]} {
    %c0_i32 = arith.constant 0 : i32
    %0 = arith.cmpi eq, %arg1, %c0_i32 : i32
    %1 = arith.extui %0 : i1 to i32
    %c0_i32_0 = arith.constant 0 : i32
    %2 = arith.cmpi ne, %1, %c0_i32_0 : i32
    scf.if %2 {
      %cst_8 = arith.constant 0.000000e+00 : f32
      %12 = vector.broadcast %cst_8 : f32 to vector<8x256xf32>
      %c0_9 = arith.constant 0 : index
      %c0_10 = arith.constant 0 : index
      %13 = vector.load %arg5[%c0_9, %c0_10] : memref<8x256xf32, #tpu.memory_space<vmem>>, vector<8x256xf32>
      tpu.vector_store %arg5[%c0_9, %c0_10], %12 {strides = array<i32>} : memref<8x256xf32, #tpu.memory_space<vmem>>, vector<8x256xf32>,
    } else {
    }
    %c0 = arith.constant 0 : index
    %c0_1 = arith.constant 0 : index
    %3 = vector.load %arg5[%c0, %c0_1] : memref<8x256xf32, #tpu.memory_space<vmem>>, vector<8x256xf32>
    %c0_2 = arith.constant 0 : index
    %c0_3 = arith.constant 0 : index
    %c0_4 = arith.constant 0 : index
    %4 = vector.load %arg2[%c0_2, %c0_3, %c0_4] : memref<8x16x256xbf16, #tpu.memory_space<vmem>>, vector<8x16x256xbf16>
    %5 = arith.extf %4 : vector<8x16x256xbf16> to vector<8x16x256xf32>
    %cst = arith.constant dense<0.000000e+00> : vector<8x256xf32>
    %6 = vector.multi_reduction <add>, %5, %cst [1] : vector<8x16x256xf32> to vector<8x256xf32>
    %7 = arith.addf %3, %6 : vector<8x256xf32>
    %c0_5 = arith.constant 0 : index
    %c0_6 = arith.constant 0 : index
    %8 = vector.load %arg5[%c0_5, %c0_6] : memref<8x256xf32, #tpu.memory_space<vmem>>, vector<8x256xf32>
    tpu.vector_store %arg5[%c0_5, %c0_6], %7 {strides = array<i32>} : memref<8x256xf32, #tpu.memory_space<vmem>>, vector<8x256xf32>,
    %c3_i32 = arith.constant 3 : i32
    %9 = arith.cmpi eq, %arg1, %c3_i32 : i32
    %10 = arith.extui %9 : i1 to i32
    %c0_i32_7 = arith.constant 0 : i32
    %11 = arith.cmpi ne, %10, %c0_i32_7 : i32
    scf.if %11 {
      %c0_8 = arith.constant 0 : index
      %c0_9 = arith.constant 0 : index
      %12 = vector.load %arg5[%c0_8, %c0_9] : memref<8x256xf32, #tpu.memory_space<vmem>>, vector<8x256xf32>
      %cst_10 = arith.constant 1.562500e-02 : f32
      %13 = vector.broadcast %cst_10 : f32 to vector<8x256xf32>
      %14 = arith.mulf %12, %13 : vector<8x256xf32>
      %15 = arith.truncf %14 : vector<8x256xf32> to vector<8x256xbf16>
      %c0_11 = arith.constant 0 : index
      %c0_12 = arith.constant 0 : index
      %16 = vector.load %arg3[%c0_11, %c0_12] : memref<256x128xbf16, #tpu.memory_space<vmem>>, vector<256x128xbf16>
      %cst_13 = arith.constant dense<0.000000e+00> : vector<8x128xf32>
      %17 = tpu.matmul %15, %16, %cst_13 {dimension_numbers = #tpu.dot_dimension_numbers<[1], [0], [0], [1], [0, 0, 1, 1], [], []>} : vector<8x256xbf16>, vector<256x128xbf16>, vector<8x128xf32> -> vector<8x128xf32>
      %c0_14 = arith.constant 0 : index
      %c0_15 = arith.constant 0 : index
      %18 = vector.load %arg4[%c0_14, %c0_15] : memref<8x128xf32, #tpu.memory_space<vmem>>, vector<8x128xf32>
      tpu.vector_store %arg4[%c0_14, %c0_15], %17 {strides = array<i32>} : memref<8x128xf32, #tpu.memory_space<vmem>>, vector<8x128xf32>,
    } else {
    }
    return
  }
  func.func @transform_0(%arg0: i32, %arg1: i32) -> (i32, i32, i32) {
    %c0_i32 = arith.constant 0 : i32
    %c0_i32_0 = arith.constant 0 : i32
    return %arg0, %arg1, %c0_i32 : i32, i32, i32
  }
  func.func @transform_1(%arg0: i32, %arg1: i32) -> (i32, i32) {
    %c0_i32 = arith.constant 0 : i32
    %c0_i32_0 = arith.constant 0 : i32
    %c0_i32_1 = arith.constant 0 : i32
    return %c0_i32, %c0_i32_0 : i32, i32
  }
  func.func @transform_2(%arg0: i32, %arg1: i32) -> (i32, i32) {
    %c0_i32 = arith.constant 0 : i32
    %c0_i32_0 = arith.constant 0 : i32
    return %arg0, %c0_i32 : i32, i32
  }
}

</mosaic_0001>

<bundles_post_ra>
// kernel: tpu_custom_call.1
= control target key start
LH: loop header
LB: loop body
LE: loop exit
PB: predicated region body
PF: predicated region fallthrough
CT: control target
= control target key end

     0   :  { %s1436_s0 = inlined_call_operand.hbm [shape: bf16[16,64,256], index: 0, kind: input, shape index: {}]   ;;  %s1437_s1 = inlined_call_operand.hbm [shape: bf16[256,128], index: 1, kind: input, shape index: {}]   ;;  %s1438_s2 = inlined_call_operand.hbm [shape: f32[16,128], index: 2, kind: output, shape index: {}]  }
   0x1   :  { %1444 = sst [smem:[#allocation21_spill]] %s1437_s1 }
   0x2   :  { %7 = vsyncpa [#allocation4], 0 }
   0x3   :  { %9 = vsyncpa [#allocation4 + $0x1], 0 }
   0x4   :  { %10 = vsyncpa [#allocation7], 0 }
   0x5   :  { %11 = vsyncpa [#allocation5], 0 }
   0x6   :  { %13 = vsyncpa [#allocation5 + $0x1], 0  ;;  %s1124_s9 = smov 0   ;;  %s1126_s10 = smov 0  }
   0x7   :  { %s1128_s11 = smov 0   ;;  %s1130_s12 = smov 0  }
   0x8   :  { %s1132_s13 = smov 0   ;;  %s1134_s14 = smov 0  }
   0x9   :  { %s1136_s15 = smov 0   ;;  %s1138_s16 = smov 0  }
   0xa   :  { %s1140_s17 = smov 0   ;;  %s1142_s18 = smov 0  }
   0xb   :  { %s1144_s19 = smov 0  }
   0xc LB: > { %1445 = sst [smem:[#allocation15_spill]] %s1077_s14  ;;  %s712_s20 = sadd.s32 4294967295, %s1097_s19   ;;  %s1097_s19 = sphi %s1144_s19, %s19_s19   ;;  %s1093_s18 = sphi %s1142_s18, %s1463_s18   ;;  %s1089_s17 = sphi %s1140_s17, %s1462_s17   ;;  %s1085_s16 = sphi %s1138_s16, %s1461_s16   ;;  %s1081_s15 = sphi %s1136_s15, %s1460_s15   ;;  %s1077_s14 = sphi %s1134_s14, %s1459_s14   ;;  %s1073_s13 = sphi %s1132_s13, %s1468_s13   ;;  %s1069_s12 = sphi %s1130_s12, %s1467_s12   ;;  %s1065_s11 = sphi %s1128_s11, %s1466_s11   ;;  %s1061_s10 = sphi %s1126_s10, %s1465_s10   ;;  %s1057_s9 = sphi %s1124_s9, %s1464_s9  }
   0xd   : > { %1446 = sst [smem:[#allocation16_spill]] %s1089_s17  ;;  %s713_s21 = sadd.s32 4294967294, %s1097_s19  }
   0xe   : > { %1447 = sst [smem:[#allocation17_spill]] %s1093_s18  ;;  %s28_s22 = sadd.s32 1, %s1089_s17 }
   0xf   : > { %s31_s23 = sadd.s32 1, %s1093_s18  ;;  %p29_p0 = scmp.ge.s32.totalorder %s28_s22, 4 }
  0x10   : > { %s40_s24 = sadd.s32 1, %s1077_s14  ;;  %p47_p1 = scmp.ne.s32.totalorder %s1077_s14, %s1073_s13 }
  0x11   : > { %p48_p2 = scmp.eq.s32.totalorder %s1097_s19, 0  ;;  %s1470_s22 = smov (%p29_p0, %s28_s22), 0 }
  0x12   : > { %1448 = sst [smem:[#allocation18_spill]] %s1470_s22  ;;  %s1472_s23 = smov (!%p29_p0, %s31_s23), %s1093_s18 }
  0x13   : > { %s36_s25 = ssub.s32 %s1089_s17, %s1470_s22  ;;  %p1190_p3 = por %p48_p2, %p47_p1 }
  0x14   : > { %p33_p4 = scmp.ge.s32.totalorder %s1472_s23, 2  ;;  %p53_p5 = scmp.ne.s32.totalorder %s1073_s13, %s1069_s12 }
  0x15   : > { %p1195_p6 = scmp.eq.s32.totalorder %s712_s20, 0  ;;  %s87_s28 = sadd.s32 1, %s1065_s11 }
  0x16   : > { %s1474_s23 = smov (%p33_p4, %s1472_s23), 0  ;;  %p97_p8 = scmp.ne.s32.totalorder %s1065_s11, %s1061_s10 }
  0x17   : > { %1451 = sst [smem:[#allocation19_spill]] %s1474_s23  ;;  %p1204_p7 = por %p1195_p6, %p53_p5 }
  0x18   : > { %s35_s30 = ssub.s32 %s1093_s18, %s1474_s23  ;;  %p98_p9 = scmp.eq.s32.totalorder %s712_s20, 7 }
  0x19   : > { %s37_s3 = sor.u32 %s36_s25, %s35_s30  ;;  %p85_p10 = scmp.eq.s32.totalorder %s35_s30, 0 }
  0x1a   : > { %p38_p11 = scmp.eq.s32.totalorder %s37_s3, 0  ;;  %p1212_p12 = por %p98_p9, %p97_p8 }
  0x1b   : > { %s1217_s5 = scalar_select %p85_p10, %s1065_s11, %s87_s28  }
  0x1c   : > { %s1220_s6 = scalar_select %p38_p11, %s1077_s14, %s40_s24  }
  0x1d   : > { %p103_p13 = scmp.ne.s32.totalorder %s1061_s10, %s1057_s9  ;;  %p104_p0 = scmp.eq.s32.totalorder %s713_s21, 7 }
  0x1e   : > { %1454 = sst [smem:[#allocation20_spill]] %s1220_s6  ;;  %p714_p1 = scmp.ge.s32.totalorder %s1097_s19, 1 }
  0x1f   : > { %p111_p2 = scmp.lt.s32.totalorder %s1097_s19, 9  ;;  %p1226_p4 = por %p104_p0, %p103_p13 }
  0x20   : > { %s1457_s1 = sld [smem:[#allocation21_spill]]  ;;  %s1099_s24 = smov [#allocation6]  }
  0x21   : > { %p1230_p5 = pnand %p714_p1, %p111_p2  ;;  %s124_s21 = sshll.u32 %s1099_s24, 4  ;;  %s125_s21 = int_to_ptr.vmem [resolvable:$true] %s124_s21 }
  0x22   : > { %s1100_s28 = smov 64   ;;  %s1101_s30 = smov 4  }
  0x23   : > { %p832_p8 = pneg %p1230_p5  ;;  %p716_p10 = scmp.ge.s32.totalorder %s1097_s19, 8 }
  0x25   : > { %p833_p9 = pnand %p832_p8, %p1195_p6  ;;  %134 = sbr.rel (%p716_p10) target bundleno = 58 (0x3a), region = 20 }
  0x26   : > { %s122_s25 = sshll.u32 %s1457_s1, 4  ;;  %s123_s25 = int_to_ptr.hbm [resolvable:$true] %s122_s25 }
  0x27   : > { %835 = dma.hbm_to_vmem [thread:$0]  (!%p833_p9), %s123_s25, 2048, %s125_s21, [#allocation7], %s1100_s28, %s1100_s28, %s1101_s30  }
  0x2a   : > { %s138_s3 = sand.u32 1, %s1077_s14   ;;  %s799_s12 = sshll.u32 %s1089_s17, 2 }
  0x2b   : > { %s717_s20 = sshll.u32 %s138_s3, 7  ;;  %s800_s24 = sshll.u32 %s1093_s18, 7 }
  0x2c   : > { %s149_s1 = sadd.s32 %s800_s24, %s799_s12  ;;  %s142_s22 = scalar_lea.vmem [#allocation3], %s717_s20 }
  0x2d   : > { %s722_s23 = sshll.u32 %s149_s1, 2  ;;  %s166_s25 = sshll.u32 %s142_s22, 4  ;;  %s167_s25 = int_to_ptr.vmem [resolvable:$true] %s166_s25 }
  0x2e   : > { %s151_s30 = scalar_lea.hbm %s1436_s0, %s722_s23  ;;  %s1102_s14 = smov 1024  }
  0x2f   : > { %s819_s6 = scalar_select %p1190_p3, [#allocation0], [#allocation11] }
  0x30   : > { %820 = sst [smem:[#allocation10]] (%p1190_p3), %s1102_s14  ;;  %s164_s18 = sshll.u32 %s151_s30, 4  ;;  %s165_s18 = int_to_ptr.hbm [resolvable:$true] %s164_s18 }
  0x31   : > { %s156_s17 = sld [smem:[%s819_s6]]   ;;  %s1103_s12 = smov 256  }
  0x32   : > { %821 = sst [smem:[#allocation10 + $0x1]] (%p1190_p3), %s1103_s12  ;;  %s1104_s1 = smov 2  }
  0x33   : > { %822 = sst [smem:[#allocation10 + $0x2]] (%p1190_p3), %s1104_s1  ;;  %s1105_s22 = smov 128  }
  0x34   : > { %823 = sst [smem:[#allocation10 + $0x3]] (%p1190_p3), %s1105_s22  ;;  %s1106_s20 = smov 8  }
  0x35   : > { %824 = sst [smem:[#allocation10 + $0x4]] (%p1190_p3), %s1105_s22  ;;  %s139_s6 = scalar_lea.sflag [#allocation4], %s138_s3 }
  0x36   : > { %825 = sst [smem:[#allocation10 + $0x5]] (%p1190_p3), %s1106_s20  ;;  %s1107_s24 = smov [#allocation9]  }
  0x37   : > { %s723_s23 = sshll.u32 %s156_s17, 26 }
  0x38   : > { %s724_s14 = sadd.s32 134217728, %s723_s23 }
  0x39   : > { %826 = dma.general (%p1190_p3), %s165_s18, 2048, %s167_s25, %s139_s6, %s1107_s24, [#allocation10], %s724_s14, 0  }
  0x3a PF: > { %191 = sbr.rel (%p1230_p5) target bundleno = 305 (0x131), region = 28  ;;  %s193_s21 = sand.u32 (!%p1230_p5), 1, %s1073_s13  }
  0x3b   : > { %s726_s28 = sshll.u32 (!%p1230_p5), %s193_s21, 7  ;;  %s194_s30 = scalar_lea.sflag (!%p1230_p5), [#allocation4], %s193_s21 }
  0x3c   : > { %s1267_s12 = scalar_lea.vmem (!%p1230_p5), [#allocation3], %s726_s28 }
  0x3f   : > { %1044 = dma.done.wait (%p1204_p7), %s194_s30, 2048  }
  0x40   : > { %1046 = vsyncadd (%p1204_p7), %s194_s30, 4294965248 }
  0x41   : > { %1048 = dma.done.wait (%p1195_p6), [#allocation7], 2048  }
  0x42   : > { %1050 = vsyncadd (%p1195_p6), [#allocation7], 4294965248  ;;  %s221_s17 = sand.u32 1, %s1061_s10   ;;  %p729_p3 = scmp.ne.s32.totalorder %s1081_s15, 0 }
  0x43   : > { %s1280_s18 = sshll.u32 %s221_s17, 3 }
  0x44   : > { %s223_s26 = scalar_lea.vmem [#allocation8], %s1280_s18  ;;  %229 = sbr.rel (%p729_p3) target bundleno = 76 (0x4c), region = 40 }
  0x49   : > { %v1108_v0 = vmov 0.0  }
  0x4a   : > { %230 = vst [vmem:[#allocation2] sm:$0xff] %v1108_v0 }
  0x4b   : > { %231 = vst [vmem:[#allocation2 + $0x8] sm:$0xff] %v1108_v0 }
  0x4c PF: > { %v234_v1 = vld [vmem:[%s1267_s12] sm:$0xff]  ;;  %v235_v2 = vld [vmem:[%s1267_s12 + $0x8] sm:$0xff]  ;;  %v236_v3 = vld [vmem:[%s1267_s12 + $0x10] sm:$0xff]  ;;  %vm410_vm0 = vcmask 1041409   ;;  %vm412_vm1 = vcmask 1042434   ;;  %vm414_vm2 = vcmask 1043459  }
  0x4d   : > { %v237_v4 = vld [vmem:[%s1267_s12 + $0x18] sm:$0xff]  ;;  %v238_v5 = vld [vmem:[%s1267_s12 + $0x20] sm:$0xff]  ;;  %v239_v6 = vld [vmem:[%s1267_s12 + $0x28] sm:$0xff]  ;;  %v250_v8 = vunpack.c.l.bf16 %v234_v1  ;;  %v251_v9 = vunpack.c.h.bf16 %v234_v1  ;;  %v252_v10 = vunpack.c.l.bf16 %v235_v2  ;;  %v253_v14 = vunpack.c.h.bf16 %v235_v2  ;;  %p730_p6 = scmp.ne.s32.totalorder %s1081_s15, 3 }
  0x4e   : > { %v240_v7 = vld [vmem:[%s1267_s12 + $0x30] sm:$0xff]  ;;  %v241_v11 = vld [vmem:[%s1267_s12 + $0x38] sm:$0xff]  ;;  %v1293_v12 = vld [vmem:[%s1267_s12 + $0x40] sm:$0xff]  ;;  %v254_v15 = vunpack.c.l.bf16 %v236_v3  ;;  %v255_v16 = vunpack.c.h.bf16 %v236_v3  ;;  %v256_v17 = vunpack.c.l.bf16 %v237_v4  ;;  %v257_v20 = vunpack.c.h.bf16 %v237_v4 }
  0x4f   : > { %v1296_v13 = vld [vmem:[%s1267_s12 + $0x48] sm:$0xff]  ;;  %v1299_v18 = vld [vmem:[%s1267_s12 + $0x50] sm:$0xff]  ;;  %v1302_v19 = vld [vmem:[%s1267_s12 + $0x58] sm:$0xff]  ;;  %v258_v21 = vunpack.c.l.bf16 %v238_v5  ;;  %v259_v22 = vunpack.c.h.bf16 %v238_v5  ;;  %v260_v23 = vunpack.c.l.bf16 %v239_v6  ;;  %v261_v26 = vunpack.c.h.bf16 %v239_v6 }
  0x50   : > { %v1305_v24 = vld [vmem:[%s1267_s12 + $0x60] sm:$0xff]  ;;  %v1308_v25 = vld [vmem:[%s1267_s12 + $0x68] sm:$0xff]  ;;  %v262_v27 = vunpack.c.l.bf16 %v240_v7  ;;  %v263_v28 = vunpack.c.h.bf16 %v240_v7  ;;  %v264_v29 = vunpack.c.l.bf16 %v241_v11  ;;  %v1311_v30 = vld [vmem:[%s1267_s12 + $0x70] sm:$0xff]  ;;  %v265_v31 = vunpack.c.h.bf16 %v241_v11 }
  0x51   : > { %v266_v32 = vunpack.c.l.bf16 %v1293_v12  ;;  %v267_v33 = vunpack.c.h.bf16 %v1293_v12  ;;  %v268_v34 = vunpack.c.l.bf16 %v1296_v13  ;;  %v269_v35 = vunpack.c.h.bf16 %v1296_v13 }
  0x52   : > { %v270_v36 = vunpack.c.l.bf16 %v1299_v18  ;;  %v271_v37 = vunpack.c.h.bf16 %v1299_v18  ;;  %v272_v38 = vunpack.c.l.bf16 %v1302_v19  ;;  %v273_v39 = vunpack.c.h.bf16 %v1302_v19 }
  0x53   : > { %v274_v40 = vunpack.c.l.bf16 %v1305_v24  ;;  %v275_v41 = vunpack.c.h.bf16 %v1305_v24  ;;  %v276_v42 = vunpack.c.l.bf16 %v1308_v25  ;;  %v277_v43 = vunpack.c.h.bf16 %v1308_v25 }
  0x54   : > { %v278_v44 = vunpack.c.l.bf16 %v1311_v30  ;;  %v282_v45 = vadd.f32 %v252_v10, %v250_v8  ;;  %v289_v46 = vadd.f32 %v253_v14, %v251_v9  ;;  %v296_v47 = vadd.f32 %v256_v17, %v254_v15  ;;  %v249_v17 = vld [vmem:[%s1267_s12 + $0x78] sm:$0xff] }
  0x55   : > { %v303_v48 = vadd.f32 %v257_v20, %v255_v16  ;;  %v310_v49 = vadd.f32 %v260_v23, %v258_v21  ;;  %v317_v50 = vadd.f32 %v261_v26, %v259_v22  ;;  %v324_v53 = vadd.f32 %v264_v29, %v262_v27 }
  0x56   : > { %v283_v51 = vrot.slane %v282_v45, 4  ;;  %v290_v52 = vrot.slane %v289_v46, 4  ;;  %v331_v54 = vadd.f32 %v265_v31, %v263_v28  ;;  %v297_v55 = vrot.slane %v296_v47, 4 }
  0x57   : > { %v304_v56 = vrot.slane %v303_v48, 4  ;;  %v311_v57 = vrot.slane %v310_v49, 4  ;;  %v318_v58 = vrot.slane %v317_v50, 4  ;;  %v325_v61 = vrot.slane %v324_v53, 4 }
  0x58   : > { %v284_v59 = vadd.f32 %v283_v51, %v282_v45  ;;  %v291_v60 = vadd.f32 %v290_v52, %v289_v46  ;;  %v332_v62 = vrot.slane %v331_v54, 4  ;;  %v298_v63 = vadd.f32 %v297_v55, %v296_v47 }
  0x59   : > { %v305_v0 = vadd.f32 %v304_v56, %v303_v48  ;;  %v312_v1 = vadd.f32 %v311_v57, %v310_v49  ;;  %v319_v2 = vadd.f32 %v318_v58, %v317_v50  ;;  %v326_v5 = vadd.f32 %v325_v61, %v324_v53 }
  0x5a   : > { %v285_v3 = vrot.slane %v284_v59, 2  ;;  %v292_v4 = vrot.slane %v291_v60, 2  ;;  %v333_v6 = vadd.f32 %v332_v62, %v331_v54  ;;  %v299_v7 = vrot.slane %v298_v63, 2 }
  0x5b   : > { %v306_v8 = vrot.slane %v305_v0, 2  ;;  %v313_v9 = vrot.slane %v312_v1, 2  ;;  %v320_v10 = vrot.slane %v319_v2, 2  ;;  %v327_v15 = vrot.slane %v326_v5, 2 }
  0x5c   : > { %v286_v11 = vadd.f32 %v285_v3, %v284_v59  ;;  %v293_v14 = vadd.f32 %v292_v4, %v291_v60  ;;  %v334_v16 = vrot.slane %v333_v6, 2  ;;  %v300_v20 = vadd.f32 %v299_v7, %v298_v63 }
  0x5d   : > { %v307_v21 = vadd.f32 %v306_v8, %v305_v0  ;;  %v314_v22 = vadd.f32 %v313_v9, %v312_v1  ;;  %v321_v23 = vadd.f32 %v320_v10, %v319_v2  ;;  %v1327_v28 = vadd.f32 %v327_v15, %v326_v5 }
  0x5e   : > { %v287_v26 = vrot.slane %v286_v11, 1  ;;  %v294_v27 = vrot.slane %v293_v14, 1  ;;  %v1329_v29 = vadd.f32 %v334_v16, %v333_v6  ;;  %v279_v31 = vunpack.c.h.bf16 %v1311_v30 }
  0x5f   : > { %v301_v45 = vrot.slane %v300_v20, 1  ;;  %v308_v46 = vrot.slane %v307_v21, 1  ;;  %v315_v47 = vrot.slane %v314_v22, 1  ;;  %v280_v48 = vunpack.c.l.bf16 %v249_v17 }
  0x60   : > { %v281_v49 = vunpack.c.h.bf16 %v249_v17  ;;  %v1332_v50 = vadd.f32 %v287_v26, %v286_v11  ;;  %v322_v51 = vrot.slane %v321_v23, 1  ;;  %v1334_v52 = vadd.f32 %v294_v27, %v293_v14 }
  0x61   : > { %v1336_v53 = vadd.f32 %v301_v45, %v300_v20  ;;  %v329_v54 = vrot.slane %v1327_v28, 1  ;;  %v336_v55 = vrot.slane %v1329_v29, 1  ;;  %v1340_v56 = vadd.f32 %v308_v46, %v307_v21 }
  0x62   : > { %v316_v57 = vadd.f32 %v315_v47, %v314_v22  ;;  %v338_v58 = vadd.f32 %v268_v34, %v266_v32  ;;  %v345_v59 = vadd.f32 %v269_v35, %v267_v33  ;;  %v352_v60 = vadd.f32 %v272_v38, %v270_v36 }
  0x63   : > { %v359_v61 = vadd.f32 %v273_v39, %v271_v37  ;;  %v366_v32 = vadd.f32 %v276_v42, %v274_v40  ;;  %v373_v12 = vadd.f32 %v277_v43, %v275_v41  ;;  %v380_v34 = vadd.f32 %v280_v48, %v278_v44 }
  0x64   : > { %v339_v13 = vrot.slane %v338_v58, 4  ;;  %v346_v33 = vrot.slane %v345_v59, 4  ;;  %v387_v35 = vadd.f32 %v281_v49, %v279_v31  ;;  %v353_v18 = vrot.slane %v352_v60, 4 }
  0x65   : > { %v360_v36 = vrot.slane %v359_v61, 4  ;;  %v367_v19 = vrot.slane %v366_v32, 4  ;;  %v374_v37 = vrot.slane %v373_v12, 4  ;;  %v381_v62 = vrot.slane %v380_v34, 4 }
  0x66   : > { %v340_v38 = vadd.f32 %v339_v13, %v338_v58  ;;  %v347_v39 = vadd.f32 %v346_v33, %v345_v59  ;;  %v388_v40 = vrot.slane %v387_v35, 4  ;;  %v354_v42 = vadd.f32 %v353_v18, %v352_v60 }
  0x67   : > { %v361_v24 = vadd.f32 %v360_v36, %v359_v61  ;;  %v368_v63 = vadd.f32 %v367_v19, %v366_v32  ;;  %v375_v25 = vadd.f32 %v374_v37, %v373_v12  ;;  %v382_v0 = vadd.f32 %v381_v62, %v380_v34  ;;  %v232_v12 = vld [vmem:[#allocation2] sm:$0xff]  ;;  %v233_v34 = vld [vmem:[#allocation2 + $0x8] sm:$0xff] }
  0x68   : > { %v341_v41 = vrot.slane %v340_v38, 2  ;;  %v348_v43 = vrot.slane %v347_v39, 2  ;;  %v389_v1 = vadd.f32 %v388_v40, %v387_v35  ;;  %v355_v30 = vrot.slane %v354_v42, 2 }
  0x69   : > { %v362_v44 = vrot.slane %v361_v24, 2  ;;  %v369_v2 = vrot.slane %v368_v63, 2  ;;  %v376_v3 = vrot.slane %v375_v25, 2  ;;  %v383_v6 = vrot.slane %v382_v0, 2 }
  0x6a   : > { %v342_v4 = vadd.f32 %v341_v41, %v340_v38  ;;  %v349_v5 = vadd.f32 %v348_v43, %v347_v39  ;;  %v390_v7 = vrot.slane %v389_v1, 2  ;;  %v356_v8 = vadd.f32 %v355_v30, %v354_v42 }
  0x6b   : > { %v363_v9 = vadd.f32 %v362_v44, %v361_v24  ;;  %v370_v10 = vadd.f32 %v369_v2, %v368_v63  ;;  %v377_v11 = vadd.f32 %v376_v3, %v375_v25  ;;  %v384_v16 = vadd.f32 %v383_v6, %v382_v0 }
  0x6c   : > { %v343_v14 = vrot.slane %v342_v4, 1  ;;  %v350_v15 = vrot.slane %v349_v5, 1  ;;  %v391_v17 = vadd.f32 %v390_v7, %v389_v1  ;;  %v323_v20 = vadd.f32 %v322_v51, %v321_v23 }
  0x6d   : > { %v357_v21 = vrot.slane %v356_v8, 1  ;;  %v364_v22 = vrot.slane %v363_v9, 1  ;;  %v371_v26 = vrot.slane %v370_v10, 1  ;;  %v330_v27 = vadd.f32 %v329_v54, %v1327_v28 }
  0x6e   : > { %v337_v31 = vadd.f32 %v336_v55, %v1329_v29  ;;  %v378_v45 = vrot.slane %v377_v11, 1  ;;  %v385_v46 = vrot.slane %v384_v16, 1  ;;  %v344_v47 = vadd.f32 %v343_v14, %v342_v4 }
  0x6f   : > { %v351_v48 = vadd.f32 %v350_v15, %v349_v5  ;;  %v358_v49 = vadd.f32 %v357_v21, %v356_v8  ;;  %v392_v58 = vrot.slane %v391_v17, 1  ;;  %v365_v59 = vadd.f32 %v364_v22, %v363_v9 }
  0x70   : > { %v372_v60 = vadd.f32 %v371_v26, %v370_v10  ;;  %v411_v61 = vsel %vm410_vm0, %v1336_v53, %v1332_v50  ;;  %vm416_vm3 = vcmask 1044484   ;;  %vm418_vm4 = vcmask 1045509  }
  0x71   : > { %v413_v23 = vsel %vm412_vm1, %v316_v57, %v411_v61  ;;  %v386_v28 = vadd.f32 %v385_v46, %v384_v16  ;;  %vm420_vm5 = vcmask 1046534   ;;  %v424_v29 = vsel %vm410_vm0, %v1340_v56, %v1334_v52 }
  0x72   : > { %v415_v51 = vsel %vm414_vm2, %v330_v27, %v413_v23  ;;  %v379_v54 = vadd.f32 %v378_v45, %v377_v11  ;;  %vm422_vm6 = vcmask 1047559   ;;  %v425_v32 = vsel %vm412_vm1, %v323_v20, %v424_v29 }
  0x73   : > { %v417_v55 = vsel %vm416_vm3, %v344_v47, %v415_v51  ;;  %v393_v13 = vadd.f32 %v392_v58, %v391_v17  ;;  %v426_v53 = vsel %vm414_vm2, %v337_v31, %v425_v32 }
  0x74   : > { %v419_v50 = vsel %vm418_vm4, %v358_v49, %v417_v55  ;;  %v427_v33 = vsel %vm416_vm3, %v351_v48, %v426_v53 }
  0x75   : > { %v421_v57 = vsel %vm420_vm5, %v372_v60, %v419_v50  ;;  %v428_v18 = vsel %vm418_vm4, %v365_v59, %v427_v33 }
  0x76   : > { %v423_v35 = vsel %vm422_vm6, %v386_v28, %v421_v57  ;;  %v429_v36 = vsel %vm420_vm5, %v379_v54, %v428_v18  ;;  %440 = sbr.rel (%p730_p6) target bundleno = 290 (0x122), region = 44 }
  0x77   : > { %v433_v19 = vadd.f32 %v423_v35, %v232_v12  ;;  %v430_v37 = vsel %vm422_vm6, %v393_v13, %v429_v36 }
  0x78   : > { %v434_v38 = vadd.f32 %v430_v37, %v233_v34 }
  0x79   : > { %435 = vst [vmem:[#allocation2] sm:$0xff] %v433_v19 }
  0x7a   : > { %436 = vst [vmem:[#allocation2 + $0x8] sm:$0xff] %v434_v38 }
  0x7b   : > { %v808_v52 = vld [vmem:[#allocation6 + $0x38] sm:$0xff]  ;;  %v807_v39 = vld [vmem:[#allocation6 + $0x30] sm:$0xff]  ;;  %v806_v40 = vld [vmem:[#allocation6 + $0x28] sm:$0xff] }
  0x7c   : > { %v816_v56 = vld [vmem:[#allocation6 + $0x78] sm:$0xff]  ;;  %575 = vmatpush.bf16.msra.mxu0 %v808_v52  ;;  %v815_v62 = vld [vmem:[#allocation6 + $0x70] sm:$0xff]  ;;  %v814_v42 = vld [vmem:[#allocation6 + $0x68] sm:$0xff] }
  0x7d   : > { %588 = vmatpush.bf16.msra.mxu1 %v816_v56  ;;  %v805_v24 = vld [vmem:[#allocation6 + $0x20] sm:$0xff]  ;;  %v804_v25 = vld [vmem:[#allocation6 + $0x18] sm:$0xff]  ;;  %v803_v43 = vld [vmem:[#allocation6 + $0x10] sm:$0xff] }
  0x7e   : > { %v813_v63 = vld [vmem:[#allocation6 + $0x60] sm:$0xff]  ;;  %v812_v41 = vld [vmem:[#allocation6 + $0x58] sm:$0xff]  ;;  %v811_v0 = vld [vmem:[#allocation6 + $0x50] sm:$0xff] }
  0x7f   : > { %v802_v1 = vld [vmem:[#allocation6 + $0x8] sm:$0xff]  ;;  %v801_v5 = vld [vmem:[#allocation6] sm:$0xff] }
  0x80   : > { %576 = vmatpush.bf16.msra.mxu0 %v807_v39  ;;  %v810_v30 = vld [vmem:[#allocation6 + $0x48] sm:$0xff]  ;;  %v441_v44 = vld [vmem:[#allocation2] sm:$0xff]  ;;  %v809_v6 = vld [vmem:[#allocation6 + $0x40] sm:$0xff] }
  0x81   : > { %589 = vmatpush.bf16.msra.mxu1 %v815_v62  ;;  %v442_v2 = vld [vmem:[#allocation2 + $0x8] sm:$0xff]  ;;  %v443_v3 = vmul.f32 0.015625, %v441_v44 }
  0x82   : > { %v444_v4 = vmul.f32 0.015625, %v442_v2 }
  0x83   : > { %v445_v7 = vpack.c.bf16 %v443_v3, %v443_v3 }
  0x84   : > { %577 = vmatpush.bf16.msra.mxu0 %v806_v40  ;;  %v446_v8 = vpack.c.bf16 %v444_v4, %v444_v4 }
  0x85   : > { %590 = vmatpush.bf16.msra.mxu1 %v814_v42 }
  0x88   : > { %578 = vmatpush.bf16.msra.mxu0 %v805_v24 }
  0x89   : > { %591 = vmatpush.bf16.msra.mxu1 %v813_v63 }
  0x8c   : > { %579 = vmatpush.bf16.msra.mxu0 %v804_v25 }
  0x8d   : > { %592 = vmatpush.bf16.msra.mxu1 %v812_v41 }
  0x90   : > { %580 = vmatpush.bf16.msra.mxu0 %v803_v43 }
  0x91   : > { %593 = vmatpush.bf16.msra.mxu1 %v811_v0 }
  0x94   : > { %581 = vmatpush.bf16.msra.mxu0 %v802_v1 }
  0x95   : > { %594 = vmatpush.bf16.msra.mxu1 %v810_v30 }
  0x98   : > { %582 = vmatpush.bf16.msra.mxu0 %v801_v5 }
  0x99   : > { %595 = vmatpush.bf16.msra.mxu1 %v809_v6 }
  0x9b   : > { %583 = vmatmul.bf16.vlgmr.msra.gmra.mxu0 %v445_v7 }
  0x9c   : > { %596 = vmatmul.bf16.vlgmr.msra.gmra.mxu1 %v446_v8 }
 0x118   : > { %v584_v9 = vpop.f32.mrf.mxu0 }
 0x119   : > { %v597_v10 = vpop.f32.mrf.mxu1 }
 0x11a   : > { %v598_v11 = vadd.f32 %v597_v10, %v584_v9 }
 0x11c   : > { %601 = vst [vmem:[%s223_s26] sm:$0xff] %v598_v11 }
 0x120   : > { %v586_v14 = vpop.f32.mrf.mxu0 }
 0x121   : > { %v599_v15 = vpop.f32.mrf.mxu1 }
 0x122 PF: > { %s796_s15 = sshll.u32 %s1085_s16, 3  ;;  %s615_s3 = sshll.u32 %s223_s26, 4  ;;  %s616_s3 = int_to_ptr.vmem [resolvable:$true] %s615_s3 }
 0x123   : > { %s613_s8 = scalar_lea.hbm %s1438_s2, %s796_s15  ;;  %s603_s1 = scalar_lea.sflag [#allocation5], %s221_s17 }
 0x124   : > { %s617_s25 = sshll.u32 %s613_s8, 4  ;;  %s991_s14 = scalar_lea.hbm %s1438_s2, 16  ;;  %s618_s25 = int_to_ptr.hbm [resolvable:$true] %s617_s25 }
 0x125   : > { %s985_s22 = sshra.s32 %s618_s25, 4  ;;  %s986_s22 = int_to_ptr.hbm [resolvable:$true] %s985_s22 }
 0x126   : > { %s987_s23 = scalar_lea.hbm %s986_s22, 8  ;;  %p992_p0 = scmp.lt.s32.totalorder %s986_s22, %s1438_s2 }
 0x127   : > { %p988_p7 = scmp.ne.s32.totalorder %s986_s22, %s987_s23  ;;  %p993_p1 = scmp.lt.s32.totalorder %s991_s14, %s987_s23 }
 0x129   : > { %p989_p11 = pnand %p988_p7, %p1212_p12  ;;  %p994_p2 = por %p993_p1, %p992_p0 }
 0x12b   : > { %p990_p13 = pneg %p989_p11 }
 0x12d   : > { %p995_p5 = pnand %p994_p2, %p990_p13 }
 0x12f   : > { %998 = shalt.err (!%p995_p5)
}
 0x130   : > { %830 = dma.vmem_to_hbm [thread:$0]  (%p1212_p12), %s616_s3, 128, %s618_s25, %s603_s1  }
 0x131 PF: > { %p842_p8 = scmp.ge.s32.totalorder %s1097_s19, 2  ;;  %s629_s21 = sand.u32 1, %s1057_s9  }
 0x132   : > { %s630_s28 = scalar_lea.sflag [#allocation5], %s629_s21 }
 0x133   : > { %p837_p9 = pnand %p842_p8, %p1226_p4 }
 0x135   : > { %p838_p10 = pneg %p837_p9 }
 0x137   : > { %1052 = dma.done.wait (%p838_p10), %s630_s28, 128  }
 0x138   : > { %1054 = vsyncadd (%p838_p10), %s630_s28, 4294967168  ;;  %s19_s19 = sadd.s32 1, %s1097_s19   ;;  %s1458_s4 = sld [smem:[#allocation15_spill]] }
 0x139   : > { %p16_p3 = scmp.ge.s32.totalorder %s19_s19, 10   ;;  %s1459_s14 = sld [smem:[#allocation20_spill]] }
 0x13a   : > { %s1460_s15 = sld [smem:[#allocation16_spill]]  ;;  %s1464_s9 = smov %s1061_s10 }
 0x13b   : > { %s1461_s16 = sld [smem:[#allocation17_spill]]  ;;  %s1465_s10 = smov %s1065_s11 }
 0x13c   : > { %s1462_s17 = sld [smem:[#allocation18_spill]]  ;;  %s1466_s11 = smov %s1217_s5 }
 0x13d   : > { %s1463_s18 = sld [smem:[#allocation19_spill]]  ;;  %s1467_s12 = smov %s1073_s13 }
 0x13e   : > { %s1468_s13 = smov %s1458_s4  ;;  %18 = sbr.rel (!%p16_p3) target bundleno = 12 (0xc), region = 90 }
 0x143   :  { %636 = vsyncpa [#allocation4], 1 }
 0x144   :  { %638 = vsyncpa [#allocation4 + $0x1], 1 }
 0x145   :  { %639 = vsyncpa [#allocation7], 1 }
 0x146   :  { %640 = vsyncpa [#allocation5], 1 }
 0x147   :  { %642 = vsyncpa [#allocation5 + $0x1], 1 }

</bundles_post_ra>
